<compile_context>
chip_gen: v5e
topology: v5e:2x2
jax: 0.10.0
libtpu: 0.0.40
codegen_flags: <defaults>
</compile_context>

<pallas_src>
import functools

import jax
import jax.numpy as jnp
from jax.experimental import pallas as pl
from jax.experimental.pallas import tpu as pltpu


def _sage_mean_kernel(adj_ref, x_agg_ref, x_self_ref, w_cat_ref, bias_ref,
                      out_ref, acc_ref, *, apply_relu: bool, f_in_pad: int,
                      deg_col: int, tk: int, x_resident: bool):
    """Gridded fused SAGEConv(mean) + optional ReLU.

    Grid = (row_tiles, k_tiles). The k axis (adjacency contraction) is last / 'arbitrary'.
    acc_ref holds [x_self | sum_k adj@x_pad] in f32; the fused bf16 projection + bias + relu +
    lane-dense store run only on the final k step.
    """
    k = pl.program_id(1)
    nk = pl.num_programs(1)

    @pl.when(k == 0)
    def _():
        # First half of the accumulator carries the (padded, bf16) self features.
        acc_ref[:, :f_in_pad] = x_self_ref[...].astype(jnp.float32)
        acc_ref[:, f_in_pad:] = jnp.zeros((acc_ref.shape[0], f_in_pad), jnp.float32)

    # int8 0/1 adjacency widened to bf16 (exact) right before the MXU dot.
    adj = adj_ref[...].astype(jnp.bfloat16)
    if x_resident:
        start = pl.multiple_of(k * tk, tk)
        x_blk = x_agg_ref[pl.ds(start, tk), :]
    else:
        x_blk = x_agg_ref[...]
    # adj @ [x | 1 | 0]: aggregated features and row degree accumulate together in f32.
    acc_ref[:, f_in_pad:] += jnp.dot(adj, x_blk, preferred_element_type=jnp.float32)

    @pl.when(k == nk - 1)
    def _():
        # Degree accumulated in the "ones" column of the padded features (exact f32 sum of 0/1).
        deg = acc_ref[:, f_in_pad + deg_col:f_in_pad + deg_col + 1]          # [tm, 1]
        inv = pl.reciprocal(jnp.maximum(deg, 1.0))       # exact; once per row tile
        acc_ref[:, f_in_pad:] = acc_ref[:, f_in_pad:] * inv
        # Single fused bf16 projection: [x_self | mean_agg] @ [W_self ; W_neigh] (+ f32 bias).
        h = jnp.dot(acc_ref[...].astype(jnp.bfloat16), w_cat_ref[...],
                    preferred_element_type=jnp.float32) + bias_ref[...]
        if apply_relu:
            h = jnp.maximum(h, 0.0)
        out_ref[...] = h.astype(out_ref.dtype)           # lane-dense (128-mult) unmasked store


def _round_up(v, m):
    return ((v + m - 1) // m) * m


def _pick_tile_m(n, pref=512):
    """Row-tile size: multiple of 32 (int8 sublane packing) dividing n; >=2 tiles when possible
    so both v7x TensorCores get work via the 'parallel' axis."""
    cap = min(pref, n // 2) if n >= 64 else n
    for t in (512, 256, 128, 64, 32, 16, 8):
        if t <= cap and n % t == 0:
            return t
    return n


def _pick_tile_k(n, pref=2048):
    """Contraction-tile size: multiple of 128 dividing n (or full n)."""
    for t in (2048, 1024, 512, 256, 128):
        if t <= min(pref, n) and n % t == 0:
            return t
    return n


def _vmem_limit_bytes():
    """Derive a safe scoped-VMEM request from the hardware (None -> compiler default)."""
    try:
        cap = int(pltpu.get_tpu_info().vmem_capacity_bytes)
        return min(cap // 2, 96 * 1024 * 1024)
    except Exception:
        return None


def prepare_adjacency(adj):
    """One-time: dense 0/1 adjacency -> int8 (halves HBM bytes on the dominant adj DMA)."""
    return adj.astype(jnp.int8)


def prepare_layer_params(w_self, w_neigh, bias):
    """One-time per layer: fused zero-padded bf16 projection weight and f32 padded bias.

    Row layout of w_cat (2*F_in_pad rows):
      [0 : F_in]                 -> W_self
      [F_in : F_in_pad]          -> 0  (covers the degree "ones" column on the self half)
      [F_in_pad : F_in_pad+F_in] -> W_neigh
      [F_in_pad+F_in :]          -> 0  (covers the degree column on the neighbor half)
    """
    f_in, f_out = w_self.shape
    f_in_pad = _round_up(f_in + 1, 128)      # +1 lane reserved for the degree "ones" column
    f_out_pad = _round_up(f_out, 128)        # lane-dense output -> unmasked vector stores
    w_cat = jnp.zeros((2 * f_in_pad, f_out_pad), jnp.float32)
    w_cat = w_cat.at[:f_in, :f_out].set(w_self.astype(jnp.float32))
    w_cat = w_cat.at[f_in_pad:f_in_pad + f_in, :f_out].set(w_neigh.astype(jnp.float32))
    w_cat = w_cat.astype(jnp.bfloat16)
    bias_pad = jnp.zeros((1, f_out_pad), jnp.float32).at[0, :f_out].set(bias.astype(jnp.float32))
    return w_cat, bias_pad


def _pad_features(x, f_in_pad):
    """[N, F_in] -> bf16 [N, F_in_pad]: features | 1.0 (degree column) | zeros."""
    n, f_in = x.shape
    parts = [x.astype(jnp.bfloat16), jnp.ones((n, 1), jnp.bfloat16)]
    if f_in_pad > f_in + 1:
        parts.append(jnp.zeros((n, f_in_pad - f_in - 1), jnp.bfloat16))
    return jnp.concatenate(parts, axis=-1)


def sage_conv_pallas(adj_i8, x, w_cat, bias_pad, f_out, *, apply_relu: bool,
                     out_dtype=jnp.float32, tm: int | None = None, tk: int | None = None):
    """One SAGEConv(mean) layer (+ optional fused ReLU) via pallas_call."""
    n, f_in = x.shape
    f_in_pad = w_cat.shape[0] // 2
    f_out_pad = w_cat.shape[1]
    deg_col = f_in                                   # index of the "ones" column inside x_pad

    x_pad = _pad_features(x, f_in_pad)               # bf16, shared by self + aggregation paths

    tm = tm or _pick_tile_m(n)
    tk = tk or _pick_tile_k(n)
    grid = (n // tm, n // tk)

    # Keep x fully VMEM-resident for the aggregation path when small enough; otherwise stream
    # (tk, F_in_pad) blocks per k step.
    x_resident = n * f_in_pad * 2 <= 8 * 1024 * 1024
    if x_resident:
        x_agg_spec = pl.BlockSpec((n, f_in_pad), lambda i, k: (0, 0))
    else:
        x_agg_spec = pl.BlockSpec((tk, f_in_pad), lambda i, k: (k, 0))

    kernel = functools.partial(
        _sage_mean_kernel, apply_relu=apply_relu, f_in_pad=f_in_pad,
        deg_col=deg_col, tk=tk, x_resident=x_resident)

    out_pad = pl.pallas_call(
        kernel,
        out_shape=jax.ShapeDtypeStruct((n, f_out_pad), out_dtype),
        grid_spec=pltpu.PrefetchScalarGridSpec(
            num_scalar_prefetch=0,
            grid=grid,
            in_specs=[
                pl.BlockSpec((tm, tk), lambda i, k: (i, k)),                  # adj tile (int8)
                x_agg_spec,                                                   # x rows for aggregation
                pl.BlockSpec((tm, f_in_pad), lambda i, k: (i, 0)),            # x rows for self path
                pl.BlockSpec((2 * f_in_pad, f_out_pad), lambda i, k: (0, 0)), # fused weights (resident)
                pl.BlockSpec((1, f_out_pad), lambda i, k: (0, 0)),            # bias (resident, f32)
            ],
            out_specs=pl.BlockSpec((tm, f_out_pad), lambda i, k: (i, 0)),
            scratch_shapes=[
                pltpu.VMEM((tm, 2 * f_in_pad), jnp.float32),   # [x_self | adj@x] accumulator
            ],
        ),
        compiler_params=pltpu.CompilerParams(
            dimension_semantics=("parallel", "arbitrary"),
            vmem_limit_bytes=_vmem_limit_bytes(),
        ),
    )(adj_i8, x_pad, x_pad, w_cat, bias_pad)

    return out_pad[:, :f_out]


def graphsage_layer_forward(adj_i8, x, w_cat, bias_pad, f_out, layer_id: int, n_layers: int):
    """Mirrors GraphSAGELayer.forward (activation = ReLU, dropout = eval-mode identity).

    Hidden layers emit bf16 (consumed directly by the next layer's bf16 aggregation path);
    the final layer emits f32.
    """
    if layer_id == n_layers - 1:
        # final layer: conv only, no activation / dropout
        return sage_conv_pallas(adj_i8, x, w_cat, bias_pad, f_out,
                                apply_relu=False, out_dtype=jnp.float32)
    # layer 0: dropout -> conv -> relu -> dropout ; middle layers: conv -> relu -> dropout
    # (dropout == identity in eval mode, so both branches reduce to conv + relu)
    return sage_conv_pallas(adj_i8, x, w_cat, bias_pad, f_out,
                            apply_relu=True, out_dtype=jnp.bfloat16)


def _init_params(key, in_feats, out_feats):
    k1, k2, k3 = jax.random.split(key, 3)
    limit = (6.0 / (in_feats + out_feats)) ** 0.5
    w_self = jax.random.uniform(k1, (in_feats, out_feats), jnp.float32, -limit, limit)
    w_neigh = jax.random.uniform(k2, (in_feats, out_feats), jnp.float32, -limit, limit)
    bias = jax.random.uniform(k3, (out_feats,), jnp.float32, -0.01, 0.01)
    return w_self, w_neigh, bias


def _reference(adj, x, params, layer_id, n_layers):
    """Pure-JAX f32 reference for correctness checking."""
    w_self, w_neigh, bias = params
    deg = jnp.maximum(jnp.sum(adj, axis=-1, keepdims=True), 1.0)
    agg = (adj @ x) / deg
    h = x @ w_self + agg @ w_neigh + bias
    if layer_id != n_layers - 1:
        h = jnp.maximum(h, 0.0)
    return h


if __name__ == "__main__":
    key = jax.random.PRNGKey(0)
    k_adj, k_x, k_p = jax.random.split(key, 3)

    N = 128          # number of graph nodes
    IN_FEATS = 64
    OUT_FEATS = 32
    N_LAYERS = 3

    # Deterministic synthetic graph (dense 0/1 adjacency, ~10% edge density).
    adj = (jax.random.uniform(k_adj, (N, N)) < 0.1).astype(jnp.float32)
    x = jax.random.normal(k_x, (N, IN_FEATS), dtype=jnp.float32)
    w_self, w_neigh, bias = _init_params(k_p, IN_FEATS, OUT_FEATS)

    # One-time preprocessing shared by every layer call (hoisted out of the kernel wrapper).
    adj_i8 = prepare_adjacency(adj)
    w_cat, bias_pad = prepare_layer_params(w_self, w_neigh, bias)

    fwd = jax.jit(graphsage_layer_forward,
                  static_argnames=("f_out", "layer_id", "n_layers"))

    ok = True
    for layer_id in (0, 1, N_LAYERS - 1):
        out = fwd(adj_i8, x, w_cat, bias_pad,
                  f_out=OUT_FEATS, layer_id=layer_id, n_layers=N_LAYERS)
        out = jax.block_until_ready(out)
        ref = _reference(adj, x, (w_self, w_neigh, bias), layer_id, N_LAYERS)
        # bf16 aggregation + bf16 fused projection (+ bf16 hidden output) vs an f32 reference:
        # tolerance reflects end-to-end bf16 compute, not a kernel bug.
        ok = ok and bool(jnp.allclose(out.astype(jnp.float32), ref, atol=5e-2, rtol=5e-2))

    print("KERNEL_OK" if ok else "KERNEL_MISMATCH")
</pallas_src>

<mosaic_0001>
module attributes {stable_mosaic.version = 11 : i64} {
  func.func @_sage_mean_kernel(%arg0: i32, %arg1: i32, %arg2: memref<64x128xi8, #tpu.memory_space<vmem>>, %arg3: memref<128x128xbf16, #tpu.memory_space<vmem>>, %arg4: memref<64x128xbf16, #tpu.memory_space<vmem>>, %arg5: memref<256x128xbf16, #tpu.memory_space<vmem>>, %arg6: memref<1x128xf32, #tpu.memory_space<vmem>>, %arg7: memref<64x128xbf16, #tpu.memory_space<vmem>>, %arg8: memref<64x256xf32, #tpu.memory_space<vmem>>) attributes {dimension_semantics = [#tpu.dimension_semantics<parallel>, #tpu.dimension_semantics<arbitrary>], iteration_bounds = array<i64: 2, 1>, scalar_prefetch = 0 : i64, scratch_operands = 1 : i64, tpu.core_type = #tpu.core_type<tc>, window_params = [{transform_indices = @transform_0, window_bounds = array<i64: 64, 128>}, {pipeline_mode = #tpu.pipeline_mode<synchronous>, transform_indices = @transform_1, window_bounds = array<i64: 128, 128>}, {transform_indices = @transform_2, window_bounds = array<i64: 64, 128>}, {pipeline_mode = #tpu.pipeline_mode<synchronous>, transform_indices = @transform_3, window_bounds = array<i64: 256, 128>}, {pipeline_mode = #tpu.pipeline_mode<synchronous>, transform_indices = @transform_4, window_bounds = array<i64: 1, 128>}, {transform_indices = @transform_5, window_bounds = array<i64: 64, 128>}]} {
    %c0_i32 = arith.constant 0 : i32
    %0 = arith.cmpi eq, %arg1, %c0_i32 : i32
    %1 = arith.extui %0 : i1 to i32
    %c0_i32_0 = arith.constant 0 : i32
    %2 = arith.cmpi ne, %1, %c0_i32_0 : i32
    scf.if %2 {
      %c0_8 = arith.constant 0 : index
      %c0_9 = arith.constant 0 : index
      %16 = vector.load %arg4[%c0_8, %c0_9] : memref<64x128xbf16, #tpu.memory_space<vmem>>, vector<64x128xbf16>
      %17 = arith.extf %16 : vector<64x128xbf16> to vector<64x128xf32>
      %c0_10 = arith.constant 0 : index
      %c0_11 = arith.constant 0 : index
      %18 = vector.load %arg8[%c0_10, %c0_11] : memref<64x256xf32, #tpu.memory_space<vmem>>, vector<64x128xf32>
      tpu.vector_store %arg8[%c0_10, %c0_11], %17 {strides = array<i32>} : memref<64x256xf32, #tpu.memory_space<vmem>>, vector<64x128xf32>,
      %cst_12 = arith.constant 0.000000e+00 : f32
      %19 = vector.broadcast %cst_12 : f32 to vector<64x128xf32>
      %c0_13 = arith.constant 0 : index
      %c128_14 = arith.constant 128 : index
      %20 = vector.load %arg8[%c0_13, %c128_14] : memref<64x256xf32, #tpu.memory_space<vmem>>, vector<64x128xf32>
      tpu.vector_store %arg8[%c0_13, %c128_14], %19 {strides = array<i32>} : memref<64x256xf32, #tpu.memory_space<vmem>>, vector<64x128xf32>,
    } else {
    }
    %c0 = arith.constant 0 : index
    %c0_1 = arith.constant 0 : index
    %3 = vector.load %arg2[%c0, %c0_1] : memref<64x128xi8, #tpu.memory_space<vmem>>, vector<64x128xi8>
    %4 = arith.sitofp %3 : vector<64x128xi8> to vector<64x128xbf16>
    %c128_i32 = arith.constant 128 : i32
    %5 = arith.muli %arg1, %c128_i32 : i32
    %6 = tpu.assume_multiple %5, 128 : i32
    %7 = arith.index_cast %6 : i32 to index
    %c0_2 = arith.constant 0 : index
    %8 = vector.load %arg3[%7, %c0_2] : memref<128x128xbf16, #tpu.memory_space<vmem>>, vector<128x128xbf16>
    %c0_3 = arith.constant 0 : index
    %c128 = arith.constant 128 : index
    %9 = vector.load %arg8[%c0_3, %c128] : memref<64x256xf32, #tpu.memory_space<vmem>>, vector<64x128xf32>
    %cst = arith.constant dense<0.000000e+00> : vector<64x128xf32>
    %10 = tpu.matmul %4, %8, %cst {dimension_numbers = #tpu.dot_dimension_numbers<[1], [0], [0], [1], [0, 0, 1, 1], [], []>} : vector<64x128xbf16>, vector<128x128xbf16>, vector<64x128xf32> -> vector<64x128xf32>
    %11 = arith.addf %9, %10 : vector<64x128xf32>
    %c0_4 = arith.constant 0 : index
    %c128_5 = arith.constant 128 : index
    %12 = vector.load %arg8[%c0_4, %c128_5] : memref<64x256xf32, #tpu.memory_space<vmem>>, vector<64x128xf32>
    tpu.vector_store %arg8[%c0_4, %c128_5], %11 {strides = array<i32>} : memref<64x256xf32, #tpu.memory_space<vmem>>, vector<64x128xf32>,
    %c0_i32_6 = arith.constant 0 : i32
    %13 = arith.cmpi eq, %arg1, %c0_i32_6 : i32
    %14 = arith.extui %13 : i1 to i32
    %c0_i32_7 = arith.constant 0 : i32
    %15 = arith.cmpi ne, %14, %c0_i32_7 : i32
    scf.if %15 {
      %c0_8 = arith.constant 0 : index
      %c192 = arith.constant 192 : index
      %16 = vector.load %arg8[%c0_8, %c192] : memref<64x256xf32, #tpu.memory_space<vmem>>, vector<64x1xf32>
      %cst_9 = arith.constant 1.000000e+00 : f32
      %17 = vector.broadcast %cst_9 : f32 to vector<64x1xf32>
      %18 = arith.maximumf %16, %17 : vector<64x1xf32>
      %19 = tpu.reciprocal %18 : vector<64x1xf32> -> vector<64x1xf32>
      %c0_10 = arith.constant 0 : index
      %c128_11 = arith.constant 128 : index
      %20 = vector.load %arg8[%c0_10, %c128_11] : memref<64x256xf32, #tpu.memory_space<vmem>>, vector<64x128xf32>
      %21 = vector.broadcast %19 : vector<64x1xf32> to vector<64x128xf32>
      %22 = arith.mulf %20, %21 : vector<64x128xf32>
      %c0_12 = arith.constant 0 : index
      %c128_13 = arith.constant 128 : index
      %23 = vector.load %arg8[%c0_12, %c128_13] : memref<64x256xf32, #tpu.memory_space<vmem>>, vector<64x128xf32>
      tpu.vector_store %arg8[%c0_12, %c128_13], %22 {strides = array<i32>} : memref<64x256xf32, #tpu.memory_space<vmem>>, vector<64x128xf32>,
      %c0_14 = arith.constant 0 : index
      %c0_15 = arith.constant 0 : index
      %24 = vector.load %arg8[%c0_14, %c0_15] : memref<64x256xf32, #tpu.memory_space<vmem>>, vector<64x256xf32>
      %25 = arith.truncf %24 : vector<64x256xf32> to vector<64x256xbf16>
      %c0_16 = arith.constant 0 : index
      %c0_17 = arith.constant 0 : index
      %26 = vector.load %arg5[%c0_16, %c0_17] : memref<256x128xbf16, #tpu.memory_space<vmem>>, vector<256x128xbf16>
      %cst_18 = arith.constant dense<0.000000e+00> : vector<64x128xf32>
      %27 = tpu.matmul %25, %26, %cst_18 {dimension_numbers = #tpu.dot_dimension_numbers<[1], [0], [0], [1], [0, 0, 1, 1], [], []>} : vector<64x256xbf16>, vector<256x128xbf16>, vector<64x128xf32> -> vector<64x128xf32>
      %c0_19 = arith.constant 0 : index
      %c0_20 = arith.constant 0 : index
      %28 = vector.load %arg6[%c0_19, %c0_20] : memref<1x128xf32, #tpu.memory_space<vmem>>, vector<1x128xf32>
      %29 = vector.broadcast %28 : vector<1x128xf32> to vector<64x128xf32>
      %30 = arith.addf %27, %29 : vector<64x128xf32>
      %cst_21 = arith.constant 0.000000e+00 : f32
      %31 = vector.broadcast %cst_21 : f32 to vector<64x128xf32>
      %32 = arith.maximumf %30, %31 : vector<64x128xf32>
      %33 = arith.truncf %32 : vector<64x128xf32> to vector<64x128xbf16>
      %c0_22 = arith.constant 0 : index
      %c0_23 = arith.constant 0 : index
      %34 = vector.load %arg7[%c0_22, %c0_23] : memref<64x128xbf16, #tpu.memory_space<vmem>>, vector<64x128xbf16>
      tpu.vector_store %arg7[%c0_22, %c0_23], %33 {strides = array<i32>} : memref<64x128xbf16, #tpu.memory_space<vmem>>, vector<64x128xbf16>,
    } else {
    }
    return
  }
  func.func @transform_0(%arg0: i32, %arg1: i32) -> (i32, i32) {
    %c0_i32 = arith.constant 0 : i32
    return %arg0, %arg1 : i32, i32
  }
  func.func @transform_1(%arg0: i32, %arg1: i32) -> (i32, i32) {
    %c0_i32 = arith.constant 0 : i32
    %c0_i32_0 = arith.constant 0 : i32
    %c0_i32_1 = arith.constant 0 : i32
    return %c0_i32, %c0_i32_0 : i32, i32
  }
  func.func @transform_2(%arg0: i32, %arg1: i32) -> (i32, i32) {
    %c0_i32 = arith.constant 0 : i32
    %c0_i32_0 = arith.constant 0 : i32
    return %arg0, %c0_i32 : i32, i32
  }
  func.func @transform_3(%arg0: i32, %arg1: i32) -> (i32, i32) {
    %c0_i32 = arith.constant 0 : i32
    %c0_i32_0 = arith.constant 0 : i32
    %c0_i32_1 = arith.constant 0 : i32
    return %c0_i32, %c0_i32_0 : i32, i32
  }
  func.func @transform_4(%arg0: i32, %arg1: i32) -> (i32, i32) {
    %c0_i32 = arith.constant 0 : i32
    %c0_i32_0 = arith.constant 0 : i32
    %c0_i32_1 = arith.constant 0 : i32
    return %c0_i32, %c0_i32_0 : i32, i32
  }
  func.func @transform_5(%arg0: i32, %arg1: i32) -> (i32, i32) {
    %c0_i32 = arith.constant 0 : i32
    %c0_i32_0 = arith.constant 0 : i32
    return %arg0, %c0_i32 : i32, i32
  }
}

</mosaic_0001>

<bundles_post_ra>
// kernel: graphsage_layer_forward.1
= control target key start
LH: loop header
LB: loop body
LE: loop exit
PB: predicated region body
PF: predicated region fallthrough
CT: control target
= control target key end

     0   :  { %s1243_s18 = smov 0   ;;  %s1245_s19 = smov 0   ;;  %s1403_s0 = inlined_call_operand.vmem [shape: s8[128,128], index: 0, kind: input, shape index: {}]   ;;  %s1404_s1 = inlined_call_operand.vmem [shape: bf16[128,128], index: 1, kind: input, shape index: {}, may-alias: {1,2}]   ;;  %s1405_s2 = inlined_call_operand.vmem [shape: bf16[128,128], index: 2, kind: input, shape index: {}, may-alias: {1,2}]   ;;  %s1406_s3 = inlined_call_operand.vmem [shape: bf16[256,128], index: 3, kind: input, shape index: {}]   ;;  %s1407_s4 = inlined_call_operand.vmem [shape: f32[1,128], index: 4, kind: input, shape index: {}]   ;;  %s1408_s5 = inlined_call_operand.vmem [shape: bf16[128,128], index: 5, kind: output, shape index: {}]  }
   0x1   :  { %s1247_s20 = smov 0  }
   0x2 LB: > { %s27_s21 = sadd.s32 1, %s1206_s19  ;;  %p964_p0 = scmp.ge.s32.totalorder %s1210_s20, 1  ;;  %s1210_s20 = sphi %s1247_s20, %s15_s20   ;;  %s1206_s19 = sphi %s1245_s19, %s1410_s19   ;;  %s1202_s18 = sphi %s1243_s18, %s1409_s18  }
   0x3   : > { %p29_p1 = scmp.ge.s32.totalorder %s27_s21, 2  ;;  %p216_p2 = scmp.lt.s32.totalorder %s1210_s20, 3 }
   0x5   : > { %s1412_s21 = smov (%p29_p1, %s27_s21), 0  ;;  %p217_p3 = pnand %p964_p0, %p216_p2 }
   0x6   : > { %s965_s24 = sshll.u32 (!%p217_p3), %s1202_s18, 1  ;;  %s967_s23 = sshll.u32 (!%p217_p3), %s1202_s18, 3 }
   0x7   : > { %220 = sbr.rel (%p217_p3) target bundleno = 511 (0x1ff), region = 40  ;;  %p253_p4 = scmp.lt.s32.totalorder (!%p217_p3), %s965_s24, 3 }
   0x8   : > { %p262_p5 = scmp.lt.s32.totalorder (!%p217_p3), %s967_s23, 15 }
   0xc   : > { %v1076_v0 = vld [vmem:[%s1404_s1 + $0x38] sm:$0xff]  ;;  %v1075_v1 = vld [vmem:[%s1404_s1 + $0x30] sm:$0xff]  ;;  %v1074_v2 = vld [vmem:[%s1404_s1 + $0x28] sm:$0xff]  ;;  %s1414_s24 = smov (!%p253_p4, %s965_s24), 3  ;;  %v1212_v30 = vmov 64   ;;  %s1416_s23 = smov (!%p262_p5, %s967_s23), 15 }
   0xd   : > { %408 = vmatpush.bf16.msra.mxu0 %v1076_v0  ;;  %1135 = vmatpush.bf16.msra.mxu3 %v1076_v0  ;;  %v1073_v3 = vld [vmem:[%s1404_s1 + $0x20] sm:$0xff]  ;;  %s966_s6 = sshll.u32 %s1414_s24, 3  ;;  %v1072_v4 = vld [vmem:[%s1404_s1 + $0x18] sm:$0xff]  ;;  %v1071_v5 = vld [vmem:[%s1404_s1 + $0x10] sm:$0xff] }
   0xe   : > { %s259_s11 = scalar_lea.vmem %s1403_s0, %s966_s6  ;;  %v1070_v11 = vld [vmem:[%s1404_s1 + $0x8] sm:$0xff]  ;;  %v1069_v16 = vld [vmem:[%s1404_s1] sm:$0xff]  ;;  %1168 = vset.pattern.permute.xlu0 %v1212_v30  ;;  %1169 = vset.pattern.permute.xlu1 %v1212_v30  ;;  %s968_s6 = sshll.u32 %s1416_s23, 2 }
   0xf   : > { %v309_v6 = vld [vmem:[%s259_s11] sm:$0xff]  ;;  %v310_v19 = vld [vmem:[%s259_s11 + $0x8] sm:$0xff]  ;;  %1170 = vset.pattern.permute.xlu2 %v1212_v30  ;;  %s265_s9 = scalar_lea.vmem %s1405_s2, %s968_s6  ;;  %s1388_s16 = scalar_lea.vmem %s1408_s5, %s968_s6 }
  0x10   : > { %v311_v7 = vunpack.c.0.s8 %v309_v6  ;;  %v312_v8 = vunpack.c.1.s8 %v309_v6  ;;  %v313_v9 = vunpack.c.2.s8 %v309_v6  ;;  %v314_v10 = vunpack.c.3.s8 %v309_v6 }
  0x11   : > { %409 = vmatpush.bf16.msra.mxu0 %v1075_v1  ;;  %1136 = vmatpush.bf16.msra.mxu3 %v1075_v1  ;;  %v315_v20 = vunpack.c.0.s8 %v310_v19  ;;  %v316_v21 = vunpack.c.1.s8 %v310_v19  ;;  %v317_v25 = vunpack.c.2.s8 %v310_v19  ;;  %v318_v26 = vunpack.c.3.s8 %v310_v19 }
  0x12   : > { %v319_v12 = vcvt.s32.f32 %v311_v7  ;;  %v320_v13 = vcvt.s32.f32 %v312_v8  ;;  %v321_v14 = vcvt.s32.f32 %v313_v9  ;;  %v322_v15 = vcvt.s32.f32 %v314_v10 }
  0x13   : > { %v323_v22 = vcvt.s32.f32 %v315_v20  ;;  %v324_v23 = vcvt.s32.f32 %v316_v21  ;;  %v325_v27 = vcvt.s32.f32 %v317_v25  ;;  %v326_v28 = vcvt.s32.f32 %v318_v26 }
  0x14   : > { %v327_v17 = vpack.c.bf16 %v320_v13, %v319_v12  ;;  %v328_v18 = vpack.c.bf16 %v322_v15, %v321_v14 }
  0x15   : > { %410 = vmatpush.bf16.msra.mxu0 %v1074_v2  ;;  %1137 = vmatpush.bf16.msra.mxu3 %v1074_v2  ;;  %v329_v24 = vpack.c.bf16 %v324_v23, %v323_v22  ;;  %v330_v29 = vpack.c.bf16 %v326_v28, %v325_v27  ;;  %v1084_v22 = vld [vmem:[%s1406_s3 + $0x38] sm:$0xff]  ;;  %v1083_v27 = vld [vmem:[%s1406_s3 + $0x30] sm:$0xff] }
  0x16   : > { %v1092_v23 = vld [vmem:[%s1406_s3 + $0x78] sm:$0xff]  ;;  %796 = vmatpush.bf16.msra.mxu1 %v1084_v22  ;;  %v1091_v28 = vld [vmem:[%s1406_s3 + $0x70] sm:$0xff]  ;;  %v1129_v22 = vld [vmem:[%s265_s9 + $0x8] sm:$0xff]  }
  0x17   : > { %825 = vmatpush.bf16.msra.mxu2 %v1092_v23 }
  0x19   : > { %411 = vmatpush.bf16.msra.mxu0 %v1073_v3  ;;  %1138 = vmatpush.bf16.msra.mxu3 %v1073_v3 }
  0x1a   : > { %797 = vmatpush.bf16.msra.mxu1 %v1083_v27 }
  0x1b   : > { %826 = vmatpush.bf16.msra.mxu2 %v1091_v28 }
  0x1d   : > { %412 = vmatpush.bf16.msra.mxu0 %v1072_v4  ;;  %1139 = vmatpush.bf16.msra.mxu3 %v1072_v4 }
  0x21   : > { %413 = vmatpush.bf16.msra.mxu0 %v1071_v5  ;;  %1140 = vmatpush.bf16.msra.mxu3 %v1071_v5 }
  0x25   : > { %414 = vmatpush.bf16.msra.mxu0 %v1070_v11  ;;  %1141 = vmatpush.bf16.msra.mxu3 %v1070_v11 }
  0x29   : > { %415 = vmatpush.bf16.msra.mxu0 %v1069_v16  ;;  %1142 = vmatpush.bf16.msra.mxu3 %v1069_v16 }
  0x2c   : > { %416 = vmatmul.bf16.vlgmr.msra.gmra.mxu0 %v327_v17  ;;  %421 = vmatmul.bf16.vlgmr.msra.gmra.mxu3 %v328_v18 }
  0x3c   : > { %426 = vmatmul.bf16.gmra.mxu3 %v329_v24 }
  0x4c   : > { %431 = vmatmul.bf16.gmra.mxu3 %v330_v29 }
  0xa9   : > { %v1291_v31 = vpop.f32.mrf.mxu0 }
  0xaa   : > { %v464_v32 = vmax.f32 %v1291_v31, 1.0 }
  0xac   : > { %1172 = vrcp.f32 %v464_v32  ;;  %v483_v40 = vand.u32 2147483648, %v464_v32  ;;  %v481_v43 = vand.u32 2147483647, %v464_v32  ;;  %vm477_vm1 = vweird.f32 %v464_v32 }
  0xae   : > { %v484_v49 = vor.u32 1.1754944e-38, %v483_v40  ;;  %vm482_vm3 = vcmp.eq.f32.partialorder %v481_v43, 8.507059e+37  ;;  %v1090_v40 = vld [vmem:[%s1406_s3 + $0x68] sm:$0xff] }
  0xaf   : > { %v1294_v33 = vpop.f32.mrf.mxu3  ;;  %827 = vmatpush.bf16.msra.mxu2 %v1090_v40 }
  0xb0   : > { %v466_v34 = vmax.f32 %v1294_v33, 1.0 }
  0xb1   : > { %v1297_v35 = vpop.f32.mrf.mxu0 }
  0xb2   : > { %v1173_v36 = vpop.eup %1172  ;;  %1174 = vrcp.f32 %v466_v34  ;;  %v465_v37 = vmax.f32 %v1297_v35, 1.0  ;;  %v509_v54 = vand.u32 2147483647, %v466_v34  ;;  %v511_v55 = vand.u32 2147483648, %v466_v34 }
  0xb3   : > { %v473_v38 = vmul.f32 %v1173_v36, %v464_v32  ;;  %vm478_vm0 = vweird.f32 %v1173_v36  ;;  %vm505_vm4 = vweird.f32 %v466_v34 }
  0xb4   : > { %1176 = vrcp.f32 %v465_v37  ;;  %vm479_vm2 = vmor %vm477_vm1, %vm478_vm0  ;;  %v497_v58 = vand.u32 2147483648, %v465_v37  ;;  %v495_v62 = vand.u32 2147483647, %v465_v37  ;;  %vm510_vm8 = vcmp.eq.f32.partialorder %v509_v54, 8.507059e+37 }
  0xb5   : > { %v474_v39 = vsub.f32 1.0, %v473_v38  ;;  %v512_v1 = vor.u32 1.1754944e-38, %v511_v55  ;;  %vm491_vm9 = vweird.f32 %v465_v37 }
  0xb6   : > { %v498_v6 = vor.u32 1.1754944e-38, %v497_v58  ;;  %vm496_vm11 = vcmp.eq.f32.partialorder %v495_v62, 8.507059e+37 }
  0xb7   : > { %v1300_v41 = vpop.f32.mrf.mxu3  ;;  %v475_v42 = vmul.f32 %v1173_v36, %v474_v39  ;;  %v1082_v39 = vld [vmem:[%s1406_s3 + $0x28] sm:$0xff] }
  0xb8   : > { %v1175_v44 = vpop.eup %1174  ;;  %v467_v45 = vmax.f32 %v1300_v41, 1.0  ;;  %798 = vmatpush.bf16.msra.mxu1 %v1082_v39 }
  0xb9   : > { %v476_v46 = vadd.f32 %v1173_v36, %v475_v42  ;;  %v501_v47 = vmul.f32 %v1175_v44, %v466_v34  ;;  %vm506_vm5 = vweird.f32 %v1175_v44 }
  0xba   : > { %v1177_v48 = vpop.eup %1176  ;;  %1178 = vrcp.f32 %v467_v45  ;;  %vm507_vm7 = vmor %vm505_vm4, %vm506_vm5  ;;  %v525_v10 = vand.u32 2147483648, %v467_v45  ;;  %v523_v12 = vand.u32 2147483647, %v467_v45  ;;  %vm519_vm13 = vweird.f32 %v467_v45 }
  0xbb   : > { %v480_v50 = vsel %vm479_vm2, %v1173_v36, %v476_v46  ;;  %v502_v51 = vsub.f32 1.0, %v501_v47  ;;  %v487_v52 = vmul.f32 %v1177_v48, %v465_v37  ;;  %vm492_vm6 = vweird.f32 %v1177_v48  ;;  %v1081_v47 = vld [vmem:[%s1406_s3 + $0x20] sm:$0xff] }
  0xbc   : > { %v485_v53 = vsel %vm482_vm3, %v484_v49, %v480_v50  ;;  %vm493_vm10 = vmor %vm491_vm9, %vm492_vm6  ;;  %v526_v17 = vor.u32 1.1754944e-38, %v525_v10  ;;  %vm524_vm15 = vcmp.eq.f32.partialorder %v523_v12, 8.507059e+37  ;;  %799 = vmatpush.bf16.msra.mxu1 %v1081_v47 }
  0xbd   : > { %586 = vperm.xlu0 %1168, %v485_v53   ;;  %v503_v56 = vmul.f32 %v1175_v44, %v502_v51  ;;  %v488_v57 = vsub.f32 1.0, %v487_v52 }
  0xbf   : > { %v1303_v59 = vpop.f32.mrf.mxu3  ;;  %v504_v60 = vadd.f32 %v1175_v44, %v503_v56  ;;  %v489_v61 = vmul.f32 %v1177_v48, %v488_v57  ;;  %v1080_v56 = vld [vmem:[%s1406_s3 + $0x18] sm:$0xff] }
  0xc0   : > { %v1179_v63 = vpop.eup %1178  ;;  %v468_v0 = vmax.f32 %v1303_v59, 1.0  ;;  %v1088_v57 = vld [vmem:[%s1406_s3 + $0x58] sm:$0xff]  ;;  %800 = vmatpush.bf16.msra.mxu1 %v1080_v56 }
  0xc1   : > { %v508_v2 = vsel %vm507_vm7, %v1175_v44, %v504_v60  ;;  %v490_v3 = vadd.f32 %v1177_v48, %v489_v61  ;;  %v515_v4 = vmul.f32 %v1179_v63, %v467_v45  ;;  %vm520_vm12 = vweird.f32 %v1179_v63 }
  0xc2   : > { %1180 = vrcp.f32 %v468_v0  ;;  %v513_v5 = vsel %vm510_vm8, %v512_v1, %v508_v2  ;;  %vm521_vm14 = vmor %vm519_vm13, %vm520_vm12  ;;  %v539_v24 = vand.u32 2147483648, %v468_v0  ;;  %vm533_vm0 = vweird.f32 %v468_v0 }
  0xc3   : > { %596 = vperm.xlu1 %1169, %v513_v5   ;;  %v494_v7 = vsel %vm493_vm10, %v1177_v48, %v490_v3  ;;  %v516_v8 = vsub.f32 1.0, %v515_v4  ;;  %v537_v26 = vand.u32 2147483647, %v468_v0  ;;  %v1089_v48 = vld [vmem:[%s1406_s3 + $0x60] sm:$0xff] }
  0xc4   : > { %v499_v9 = vsel %vm496_vm11, %v498_v6, %v494_v7  ;;  %v540_v36 = vor.u32 1.1754944e-38, %v539_v24  ;;  %828 = vmatpush.bf16.msra.mxu2 %v1089_v48  ;;  %v1130_v24 = vld [vmem:[%s265_s9 + $0x10] sm:$0xff]   ;;  %v1171_v48 = vld [vmem:[%s1407_s4] ss:$0 sm:$0xff] }
  0xc5   : > { %591 = vperm.xlu0 %1168, %v499_v9   ;;  %v517_v11 = vmul.f32 %v1179_v63, %v516_v8  ;;  %vm538_vm3 = vcmp.eq.f32.partialorder %v537_v26, 8.507059e+37 }
  0xc7   : > { %v1306_v13 = vpop.f32.mrf.mxu3  ;;  %v518_v14 = vadd.f32 %v1179_v63, %v517_v11 }
  0xc8   : > { %v1181_v15 = vpop.eup %1180  ;;  %v469_v16 = vmax.f32 %v1306_v13, 1.0  ;;  %829 = vmatpush.bf16.msra.mxu2 %v1088_v57 }
  0xc9   : > { %v522_v18 = vsel %vm521_vm14, %v1179_v63, %v518_v14  ;;  %v529_v19 = vmul.f32 %v1181_v15, %v468_v0  ;;  %vm534_vm1 = vweird.f32 %v1181_v15  ;;  %v1079_v0 = vld [vmem:[%s1406_s3 + $0x10] sm:$0xff] }
  0xca   : > { %1182 = vrcp.f32 %v469_v16  ;;  %v527_v20 = vsel %vm524_vm15, %v526_v17, %v522_v18  ;;  %vm535_vm2 = vmor %vm533_vm0, %vm534_vm1  ;;  %v553_v44 = vand.u32 2147483648, %v469_v16  ;;  %v551_v46 = vand.u32 2147483647, %v469_v16  ;;  %801 = vmatpush.bf16.msra.mxu1 %v1079_v0  ;;  %v1087_v17 = vld [vmem:[%s1406_s3 + $0x50] sm:$0xff]  ;;  %v1077_v18 = vld [vmem:[%s1406_s3] sm:$0xff] }
  0xcb   : > { %601 = vperm.xlu1 %1169, %v527_v20   ;;  %v530_v21 = vsub.f32 1.0, %v529_v19  ;;  %vm547_vm5 = vweird.f32 %v469_v16  ;;  %v1086_v19 = vld [vmem:[%s1406_s3 + $0x48] sm:$0xff]  ;;  %v1094_v20 = vld [vmem:[%s265_s9] sm:$0xff]  }
  0xcc   : > { %v554_v53 = vor.u32 1.1754944e-38, %v553_v44  ;;  %vm552_vm7 = vcmp.eq.f32.partialorder %v551_v46, 8.507059e+37  ;;  %830 = vmatpush.bf16.msra.mxu2 %v1087_v17 }
  0xcd   : > { %v531_v25 = vmul.f32 %v1181_v15, %v530_v21  ;;  %v1085_v21 = vld [vmem:[%s1406_s3 + $0x40] sm:$0xff] }
  0xcf   : > { %v1321_v29 = vpop.f32.mrf.mxu3  ;;  %v532_v30 = vadd.f32 %v1181_v15, %v531_v25 }
  0xd0   : > { %v1183_v32 = vpop.eup %1182  ;;  %v470_v34 = vmax.f32 %v1321_v29, 1.0  ;;  %831 = vmatpush.bf16.msra.mxu2 %v1086_v19 }
  0xd1   : > { %v536_v37 = vsel %vm535_vm2, %v1181_v15, %v532_v30  ;;  %v543_v38 = vmul.f32 %v1183_v32, %v469_v16  ;;  %vm548_vm4 = vweird.f32 %v1183_v32  ;;  %v1078_v16 = vld [vmem:[%s1406_s3 + $0x8] sm:$0xff] }
  0xd2   : > { %1184 = vrcp.f32 %v470_v34  ;;  %v541_v42 = vsel %vm538_vm3, %v540_v36, %v536_v37  ;;  %vm549_vm6 = vmor %vm547_vm5, %vm548_vm4  ;;  %v567_v61 = vand.u32 2147483648, %v470_v34  ;;  %vm561_vm8 = vweird.f32 %v470_v34  ;;  %802 = vmatpush.bf16.msra.mxu1 %v1078_v16  ;;  %v1131_v36 = vld [vmem:[%s265_s9 + $0x18] sm:$0xff]  }
  0xd3   : > { %606 = vperm.xlu2 %1170, %v541_v42   ;;  %v544_v43 = vsub.f32 1.0, %v543_v38  ;;  %v565_v63 = vand.u32 2147483647, %v470_v34 }
  0xd4   : > { %v568_v3 = vor.u32 1.1754944e-38, %v567_v61  ;;  %832 = vmatpush.bf16.msra.mxu2 %v1085_v21 }
  0xd5   : > { %v545_v45 = vmul.f32 %v1183_v32, %v544_v43  ;;  %vm566_vm11 = vcmp.eq.f32.partialorder %v565_v63, 8.507059e+37 }
  0xd6   : > { %803 = vmatpush.bf16.msra.mxu1 %v1077_v18 }
  0xd7   : > { %v1336_v49 = vpop.f32.mrf.mxu3  ;;  %v546_v50 = vadd.f32 %v1183_v32, %v545_v45 }
  0xd8   : > { %v1185_v51 = vpop.eup %1184  ;;  %v471_v52 = vmax.f32 %v1336_v49, 1.0 }
  0xd9   : > { %v550_v54 = vsel %vm549_vm6, %v1183_v32, %v546_v50  ;;  %v557_v55 = vmul.f32 %v1185_v51, %v470_v34  ;;  %vm562_vm9 = vweird.f32 %v1185_v51  ;;  %804 = vmatmul.bf16.vlgmr.msra.gmra.mxu1 %v1094_v20 }
  0xda   : > { %1186 = vrcp.f32 %v471_v52  ;;  %v555_v58 = vsel %vm552_vm7, %v554_v53, %v550_v54  ;;  %vm563_vm10 = vmor %vm561_vm8, %vm562_vm9  ;;  %v581_v8 = vand.u32 2147483648, %v471_v52  ;;  %v579_v10 = vand.u32 2147483647, %v471_v52 }
  0xdb   : > { %611 = vperm.xlu2 %1170, %v555_v58   ;;  %v558_v60 = vsub.f32 1.0, %v557_v55  ;;  %vm575_vm13 = vweird.f32 %v471_v52 }
  0xdc   : > { %v582_v12 = vor.u32 1.1754944e-38, %v581_v8  ;;  %vm580_vm15 = vcmp.eq.f32.partialorder %v579_v10, 8.507059e+37 }
  0xdd   : > { %v559_v62 = vmul.f32 %v1185_v51, %v558_v60 }
  0xdf   : > { %v560_v1 = vadd.f32 %v1185_v51, %v559_v62 }
  0xe0   : > { %v1187_v2 = vpop.eup %1186 }
  0xe1   : > { %v564_v4 = vsel %vm563_vm10, %v1185_v51, %v560_v1  ;;  %v571_v5 = vmul.f32 %v1187_v2, %v471_v52  ;;  %vm576_vm12 = vweird.f32 %v1187_v2 }
  0xe2   : > { %v569_v6 = vsel %vm566_vm11, %v568_v3, %v564_v4  ;;  %vm577_vm14 = vmor %vm575_vm13, %vm576_vm12 }
  0xe3   : > { %616 = vperm.xlu0 %1168, %v569_v6   ;;  %v572_v7 = vsub.f32 1.0, %v571_v5 }
  0xe5   : > { %v573_v9 = vmul.f32 %v1187_v2, %v572_v7 }
  0xe7   : > { %v574_v11 = vadd.f32 %v1187_v2, %v573_v9 }
  0xe9   : > { %v578_v14 = vsel %vm577_vm14, %v1187_v2, %v574_v11  ;;  %809 = vmatmul.bf16.gmra.mxu1 %v1129_v22 }
  0xea   : > { %v583_v15 = vsel %vm580_vm15, %v582_v12, %v578_v14 }
  0xeb   : > { %621 = vperm.xlu1 %1169, %v583_v15  }
  0xf9   : > { %814 = vmatmul.bf16.gmra.mxu1 %v1130_v24 }
 0x109   : > { %819 = vmatmul.bf16.gmra.mxu1 %v1131_v36 }
 0x12d   : > { %v607_v38 = vpop.permute.xlu2 %606 }
 0x12f   : > { %v587_v23 = vpop.permute.xlu0 %586 }
 0x130   : > { %v624_v26 = vmul.f32 %v587_v23, %v1291_v31  ;;  %v628_v31 = vmul.f32 %v607_v38, %v1303_v59 }
 0x135   : > { %v597_v28 = vpop.permute.xlu1 %596  ;;  %v612_v40 = vpop.permute.xlu2 %611 }
 0x136   : > { %v626_v37 = vmul.f32 %v597_v28, %v1294_v33  ;;  %v629_v42 = vmul.f32 %v612_v40, %v1306_v13 }
 0x137   : > { %v592_v25 = vpop.permute.xlu0 %591 }
 0x138   : > { %v625_v27 = vmul.f32 %v592_v25, %v1297_v35  ;;  %v661_v35 = vpack.c.bf16 %v629_v42, %v628_v31 }
 0x13a   : > { %v657_v30 = vpack.c.bf16 %v625_v27, %v624_v26 }
 0x13c   : > { %833 = vmatmul.bf16.vlgmr.msra.gmra.mxu2 %v657_v30 }
 0x13d   : > { %v602_v32 = vpop.permute.xlu1 %601 }
 0x13e   : > { %v627_v34 = vmul.f32 %v602_v32, %v1300_v41 }
 0x140   : > { %v659_v39 = vpack.c.bf16 %v627_v34, %v626_v37 }
 0x14c   : > { %838 = vmatmul.bf16.gmra.mxu2 %v659_v39 }
 0x155   : > { %v617_v44 = vpop.permute.xlu0 %616 }
 0x156   : > { %v630_v41 = vmul.f32 %v617_v44, %v1321_v29  ;;  %v805_v33 = vpop.f32.mrf.mxu1 }
 0x157   : > { %v806_v59 = vadd.f32 %v1171_v48, %v805_v33 }
 0x15c   : > { %843 = vmatmul.bf16.gmra.mxu2 %v661_v35 }
 0x15d   : > { %v622_v43 = vpop.permute.xlu1 %621 }
 0x15e   : > { %v631_v45 = vmul.f32 %v622_v43, %v1336_v49  ;;  %v807_v47 = vpop.f32.mrf.mxu1 }
 0x15f   : > { %v808_v51 = vadd.f32 %v1171_v48, %v807_v47 }
 0x160   : > { %v663_v46 = vpack.c.bf16 %v631_v45, %v630_v41 }
 0x166   : > { %v810_v50 = vpop.f32.mrf.mxu1 }
 0x167   : > { %v811_v58 = vadd.f32 %v1171_v48, %v810_v50 }
 0x16c   : > { %848 = vmatmul.bf16.gmra.mxu2 %v663_v46 }
 0x16e   : > { %v812_v29 = vpop.f32.mrf.mxu1 }
 0x16f   : > { %v813_v61 = vadd.f32 %v1171_v48, %v812_v29 }
 0x176   : > { %v815_v60 = vpop.f32.mrf.mxu1 }
 0x177   : > { %v816_v6 = vadd.f32 %v1171_v48, %v815_v60 }
 0x17e   : > { %v817_v4 = vpop.f32.mrf.mxu1 }
 0x17f   : > { %v818_v7 = vadd.f32 %v1171_v48, %v817_v4 }
 0x186   : > { %v820_v11 = vpop.f32.mrf.mxu1 }
 0x187   : > { %v821_v17 = vadd.f32 %v1171_v48, %v820_v11 }
 0x18e   : > { %v822_v18 = vpop.f32.mrf.mxu1 }
 0x18f   : > { %v823_v19 = vadd.f32 %v1171_v48, %v822_v18 }
 0x1bf   : > { %v834_v13 = vpop.f32.mrf.mxu2 }
 0x1c0   : > { %v835_v52 = vadd.f32 %v834_v13, %v806_v59 }
 0x1c2   : > { %v854_v55 = vmax.f32 %v835_v52, 0.0 }
 0x1c7   : > { %v836_v53 = vpop.f32.mrf.mxu2 }
 0x1c8   : > { %v837_v54 = vadd.f32 %v836_v53, %v808_v51 }
 0x1ca   : > { %v855_v49 = vmax.f32 %v837_v54, 0.0 }
 0x1cc   : > { %v1112_v56 = vpack.c.bf16 %v855_v49, %v854_v55 }
 0x1ce   : > { %1113 = vst [vmem:[%s1388_s16] sm:$0xff] %v1112_v56  }
 0x1cf   : > { %v839_v57 = vpop.f32.mrf.mxu2 }
 0x1d0   : > { %v840_v62 = vadd.f32 %v839_v57, %v811_v58 }
 0x1d2   : > { %v856_v1 = vmax.f32 %v840_v62, 0.0 }
 0x1d7   : > { %v841_v63 = vpop.f32.mrf.mxu2 }
 0x1d8   : > { %v842_v0 = vadd.f32 %v841_v63, %v813_v61 }
 0x1da   : > { %v857_v2 = vmax.f32 %v842_v0, 0.0 }
 0x1dc   : > { %v1117_v3 = vpack.c.bf16 %v857_v2, %v856_v1 }
 0x1de   : > { %1132 = vst [vmem:[%s1388_s16 + $0x8] sm:$0xff] %v1117_v3  }
 0x1df   : > { %v844_v5 = vpop.f32.mrf.mxu2 }
 0x1e0   : > { %v845_v8 = vadd.f32 %v844_v5, %v816_v6 }
 0x1e2   : > { %v858_v12 = vmax.f32 %v845_v8, 0.0 }
 0x1e7   : > { %v846_v9 = vpop.f32.mrf.mxu2 }
 0x1e8   : > { %v847_v10 = vadd.f32 %v846_v9, %v818_v7 }
 0x1ea   : > { %v859_v14 = vmax.f32 %v847_v10, 0.0 }
 0x1ec   : > { %v1122_v15 = vpack.c.bf16 %v859_v14, %v858_v12 }
 0x1ee   : > { %1133 = vst [vmem:[%s1388_s16 + $0x10] sm:$0xff] %v1122_v15  }
 0x1ef   : > { %v849_v16 = vpop.f32.mrf.mxu2 }
 0x1f0   : > { %v850_v20 = vadd.f32 %v849_v16, %v821_v17 }
 0x1f2   : > { %v860_v23 = vmax.f32 %v850_v20, 0.0 }
 0x1f7   : > { %v851_v21 = vpop.f32.mrf.mxu2 }
 0x1f8   : > { %v852_v22 = vadd.f32 %v851_v21, %v823_v19 }
 0x1fa   : > { %v861_v24 = vmax.f32 %v852_v22, 0.0 }
 0x1fc   : > { %v1127_v25 = vpack.c.bf16 %v861_v24, %v860_v23 }
 0x1fe   : > { %1134 = vst [vmem:[%s1388_s16 + $0x18] sm:$0xff] %v1127_v25  }
 0x1ff PF: > { %s15_s20 = sadd.s32 1, %s1210_s20   ;;  %s1409_s18 = smov %s1206_s19 }
 0x200   : > { %p12_p6 = scmp.ge.s32.totalorder %s15_s20, 4   ;;  %s1410_s19 = smov %s1412_s21 }
 0x202   :  { %14 = sbr.rel (!%p12_p6) target bundleno = 2 (0x2), region = 82 }

</bundles_post_ra>
